<compile_context>
chip_gen: v7x
topology: tpu7x:2x2x1
jax: 0.10.0
libtpu: 0.0.40
codegen_flags: <defaults>
</compile_context>

<pallas_src>
import functools

import jax
import jax.numpy as jnp
from jax.experimental import pallas as pl
from jax.experimental.pallas import tpu as pltpu

_LANE = 128
_SUBLANE = 8
_NEG_BIG = -1e30  # pad-class bias: excluded from max, contributes exp()==0


def _round_up(x, m):
    return ((x + m - 1) // m) * m


def _mlp_log_softmax_kernel(x_ref, w1_ref, b1_ref, w2_ref, b2_ref, o_ref):
    # fc1: bf16 operands, f32 accumulation on the MXU; bias + relu in f32 (VPU).
    h = jnp.dot(x_ref[...], w1_ref[...], preferred_element_type=jnp.float32)
    h = jnp.maximum(h + b1_ref[...], 0.0)

    # fc2: cast hidden back to the matmul dtype for the MXU, accumulate in f32.
    logits = jnp.dot(h.astype(w2_ref.dtype), w2_ref[...],
                     preferred_element_type=jnp.float32)
    logits = logits + b2_ref[...]  # padded class columns carry -1e30 bias

    # Numerically stable log_softmax along the class axis (exp/log -> EUP slot).
    m = jnp.max(logits, axis=-1, keepdims=True)
    shifted = logits - m
    lse = jnp.log(jnp.sum(jnp.exp(shifted), axis=-1, keepdims=True))
    o_ref[...] = (shifted - lse).astype(o_ref.dtype)


@functools.partial(jax.jit, static_argnames=("iSize", "tile_b", "matmul_dtype"))
def net_log_softmax_forward(x, w1, b1, w2, b2, iSize, *, tile_b=512,
                            matmul_dtype=jnp.bfloat16):
    """x: any shape flattening to (B, iSize*iSize); returns (B, num) log-probs."""
    in_features = iSize * iSize
    x2d = x.reshape(-1, in_features)
    B = x2d.shape[0]
    Neuron = w1.shape[1]
    num = w2.shape[1]

    # Pad feature / hidden / class dims to lane-dense, MXU-friendly multiples of 128.
    k_pad = _round_up(in_features, _LANE)
    n_pad = _round_up(Neuron, _LANE)
    c_pad = _round_up(num, _LANE)

    # Batch tiling: >=8-row sublane alignment, cap at tile_b (512-1024 sweet spot).
    tb = min(tile_b, _round_up(B, _SUBLANE))
    B_pad = _round_up(B, tb)

    f32 = jnp.float32
    x_p = jnp.zeros((B_pad, k_pad), matmul_dtype)
    x_p = x_p.at[:B, :in_features].set(x2d.astype(matmul_dtype))
    w1_p = jnp.zeros((k_pad, n_pad), matmul_dtype)
    w1_p = w1_p.at[:in_features, :Neuron].set(w1.astype(matmul_dtype))
    b1_p = jnp.zeros((1, n_pad), f32).at[0, :Neuron].set(b1.astype(f32))
    w2_p = jnp.zeros((n_pad, c_pad), matmul_dtype)
    w2_p = w2_p.at[:Neuron, :num].set(w2.astype(matmul_dtype))
    # Padded classes get a huge negative bias so log-softmax ignores them.
    b2_p = jnp.full((1, c_pad), _NEG_BIG, f32).at[0, :num].set(b2.astype(f32))

    grid = (B_pad // tb,)

    # Explicit VMEM budget: double-buffered activation/output tiles + resident
    # weights + f32 hidden intermediate, x2 safety factor + 4 MiB headroom
    # (kept under v7x's 64 MiB per-TC VMEM).
    itm = jnp.dtype(matmul_dtype).itemsize
    vmem_need = (2 * tb * k_pad * itm          # double-buffered input tile
                 + 2 * tb * c_pad * 4          # double-buffered output tile
                 + k_pad * n_pad * itm         # resident w1
                 + n_pad * c_pad * itm         # resident w2
                 + (n_pad + c_pad) * 4         # resident biases
                 + tb * n_pad * 4)             # f32 hidden intermediate
    vmem_limit = min(2 * int(vmem_need) + (4 << 20), 64 << 20)

    bytes_accessed = int(x_p.size * itm + w1_p.size * itm + w2_p.size * itm
                         + (b1_p.size + b2_p.size) * 4 + B_pad * c_pad * 4)
    cost = pl.CostEstimate(
        flops=int(2 * B_pad * (k_pad * n_pad + n_pad * c_pad)),
        transcendentals=int(B_pad * c_pad),      # exp in the softmax
        bytes_accessed=bytes_accessed,
    )

    out_padded = pl.pallas_call(
        _mlp_log_softmax_kernel,
        out_shape=jax.ShapeDtypeStruct((B_pad, c_pad), jnp.float32),
        grid_spec=pltpu.PrefetchScalarGridSpec(
            num_scalar_prefetch=0,
            grid=grid,
            in_specs=[
                pl.BlockSpec((tb, k_pad), lambda i: (i, 0)),     # x tile (pipelined)
                pl.BlockSpec((k_pad, n_pad), lambda i: (0, 0)),  # w1 (resident)
                pl.BlockSpec((1, n_pad), lambda i: (0, 0)),      # b1 (resident)
                pl.BlockSpec((n_pad, c_pad), lambda i: (0, 0)),  # w2 (resident)
                pl.BlockSpec((1, c_pad), lambda i: (0, 0)),      # b2 (resident)
            ],
            out_specs=pl.BlockSpec((tb, c_pad), lambda i: (i, 0)),
        ),
        compiler_params=pltpu.CompilerParams(
            dimension_semantics=("parallel",),
            vmem_limit_bytes=vmem_limit,
        ),
        cost_estimate=cost,
    )(x_p, w1_p, b1_p, w2_p, b2_p)

    return out_padded[:B, :num]


def init_params(key, iSize, Neuron, num):
    """Deterministic init mimicking torch.nn.Linear (uniform +/- 1/sqrt(fan_in))."""
    k1, k2, k3, k4 = jax.random.split(key, 4)
    in1 = iSize * iSize
    bound1 = 1.0 / jnp.sqrt(in1)
    bound2 = 1.0 / jnp.sqrt(Neuron)
    w1 = jax.random.uniform(k1, (in1, Neuron), jnp.float32, -bound1, bound1)
    b1 = jax.random.uniform(k2, (Neuron,), jnp.float32, -bound1, bound1)
    w2 = jax.random.uniform(k3, (Neuron, num), jnp.float32, -bound2, bound2)
    b2 = jax.random.uniform(k4, (num,), jnp.float32, -bound2, bound2)
    return w1, b1, w2, b2


def _reference(x, w1, b1, w2, b2, iSize, matmul_dtype=jnp.bfloat16):
    """Plain-JAX reference with the same bf16-operand / f32-accumulate recipe."""
    x2d = x.reshape(-1, iSize * iSize)
    h = jnp.dot(x2d.astype(matmul_dtype), w1.astype(matmul_dtype),
                preferred_element_type=jnp.float32) + b1.astype(jnp.float32)
    h = jnp.maximum(h, 0.0)
    logits = jnp.dot(h.astype(matmul_dtype), w2.astype(matmul_dtype),
                     preferred_element_type=jnp.float32) + b2.astype(jnp.float32)
    return logits - jax.scipy.special.logsumexp(logits, axis=1, keepdims=True)


if __name__ == "__main__":
    # Small shapes: num=10 classes, iSize=16 (256 input features), Neuron=32.
    num, iSize, Neuron = 10, 16, 32
    B = 2

    key = jax.random.PRNGKey(0)
    kx, kp = jax.random.split(key)
    x = jax.random.normal(kx, (B, 1, iSize, iSize), jnp.float32)  # NCHW-like input
    w1, b1, w2, b2 = init_params(kp, iSize, Neuron, num)

    out = net_log_softmax_forward(x, w1, b1, w2, b2, iSize)
    out = jax.block_until_ready(out)

    ref = _reference(x, w1, b1, w2, b2, iSize)
    assert out.shape == (B, num), out.shape
    assert jnp.allclose(out, ref, atol=1e-4, rtol=1e-4), jnp.max(jnp.abs(out - ref))
    # Log-probs should logsumexp to ~0 per row.
    assert jnp.allclose(jax.scipy.special.logsumexp(out, axis=1),
                        jnp.zeros((B,)), atol=1e-4)

    print("KERNEL_OK")
</pallas_src>

<mosaic_0001>
module attributes {stable_mosaic.version = 11 : i64} {
  func.func @_mlp_log_softmax_kernel(%arg0: i32, %arg1: memref<8x256xbf16, #tpu.memory_space<vmem>>, %arg2: memref<256x128xbf16, #tpu.memory_space<vmem>>, %arg3: memref<1x128xf32, #tpu.memory_space<vmem>>, %arg4: memref<128x128xbf16, #tpu.memory_space<vmem>>, %arg5: memref<1x128xf32, #tpu.memory_space<vmem>>, %arg6: memref<8x128xf32, #tpu.memory_space<vmem>>) attributes {dimension_semantics = [#tpu.dimension_semantics<parallel>], iteration_bounds = array<i64: 1>, scalar_prefetch = 0 : i64, scratch_operands = 0 : i64, tpu.core_type = #tpu.core_type<tc>, window_params = [{transform_indices = @transform_0, window_bounds = array<i64: 8, 256>}, {pipeline_mode = #tpu.pipeline_mode<synchronous>, transform_indices = @transform_1, window_bounds = array<i64: 256, 128>}, {pipeline_mode = #tpu.pipeline_mode<synchronous>, transform_indices = @transform_2, window_bounds = array<i64: 1, 128>}, {pipeline_mode = #tpu.pipeline_mode<synchronous>, transform_indices = @transform_3, window_bounds = array<i64: 128, 128>}, {pipeline_mode = #tpu.pipeline_mode<synchronous>, transform_indices = @transform_4, window_bounds = array<i64: 1, 128>}, {transform_indices = @transform_5, window_bounds = array<i64: 8, 128>}]} {
    %c0 = arith.constant 0 : index
    %c0_0 = arith.constant 0 : index
    %0 = vector.load %arg1[%c0, %c0_0] : memref<8x256xbf16, #tpu.memory_space<vmem>>, vector<8x256xbf16>
    %c0_1 = arith.constant 0 : index
    %c0_2 = arith.constant 0 : index
    %1 = vector.load %arg2[%c0_1, %c0_2] : memref<256x128xbf16, #tpu.memory_space<vmem>>, vector<256x128xbf16>
    %cst = arith.constant dense<0.000000e+00> : vector<8x128xf32>
    %2 = tpu.matmul %0, %1, %cst {dimension_numbers = #tpu.dot_dimension_numbers<[1], [0], [0], [1], [0, 0, 1, 1], [], []>} : vector<8x256xbf16>, vector<256x128xbf16>, vector<8x128xf32> -> vector<8x128xf32>
    %c0_3 = arith.constant 0 : index
    %c0_4 = arith.constant 0 : index
    %3 = vector.load %arg3[%c0_3, %c0_4] : memref<1x128xf32, #tpu.memory_space<vmem>>, vector<1x128xf32>
    %4 = vector.broadcast %3 : vector<1x128xf32> to vector<8x128xf32>
    %5 = arith.addf %2, %4 : vector<8x128xf32>
    %cst_5 = arith.constant 0.000000e+00 : f32
    %6 = vector.broadcast %cst_5 : f32 to vector<8x128xf32>
    %7 = arith.maximumf %5, %6 : vector<8x128xf32>
    %8 = arith.truncf %7 : vector<8x128xf32> to vector<8x128xbf16>
    %c0_6 = arith.constant 0 : index
    %c0_7 = arith.constant 0 : index
    %9 = vector.load %arg4[%c0_6, %c0_7] : memref<128x128xbf16, #tpu.memory_space<vmem>>, vector<128x128xbf16>
    %cst_8 = arith.constant dense<0.000000e+00> : vector<8x128xf32>
    %10 = tpu.matmul %8, %9, %cst_8 {dimension_numbers = #tpu.dot_dimension_numbers<[1], [0], [0], [1], [0, 0, 1, 1], [], []>} : vector<8x128xbf16>, vector<128x128xbf16>, vector<8x128xf32> -> vector<8x128xf32>
    %c0_9 = arith.constant 0 : index
    %c0_10 = arith.constant 0 : index
    %11 = vector.load %arg5[%c0_9, %c0_10] : memref<1x128xf32, #tpu.memory_space<vmem>>, vector<1x128xf32>
    %12 = vector.broadcast %11 : vector<1x128xf32> to vector<8x128xf32>
    %13 = arith.addf %10, %12 : vector<8x128xf32>
    %cst_11 = arith.constant dense<0xFF800000> : vector<8xf32>
    %14 = vector.multi_reduction <maximumf>, %13, %cst_11 [1] : vector<8x128xf32> to vector<8xf32>
    %15 = vector.shape_cast %14 : vector<8xf32> to vector<8x1xf32>
    %16 = vector.broadcast %15 : vector<8x1xf32> to vector<8x128xf32>
    %17 = arith.subf %13, %16 : vector<8x128xf32>
    %18 = math.exp %17 : vector<8x128xf32>
    %cst_12 = arith.constant dense<0.000000e+00> : vector<8xf32>
    %19 = vector.multi_reduction <add>, %18, %cst_12 [1] : vector<8x128xf32> to vector<8xf32>
    %20 = vector.shape_cast %19 : vector<8xf32> to vector<8x1xf32>
    %21 = math.log %20 : vector<8x1xf32>
    %22 = vector.broadcast %21 : vector<8x1xf32> to vector<8x128xf32>
    %23 = arith.subf %17, %22 : vector<8x128xf32>
    %c0_13 = arith.constant 0 : index
    %c0_14 = arith.constant 0 : index
    %24 = vector.load %arg6[%c0_13, %c0_14] : memref<8x128xf32, #tpu.memory_space<vmem>>, vector<8x128xf32>
    tpu.vector_store %arg6[%c0_13, %c0_14], %23 {strides = array<i32>} : memref<8x128xf32, #tpu.memory_space<vmem>>, vector<8x128xf32>,
    return
  }
  func.func @transform_0(%arg0: i32) -> (i32, i32) {
    %c0_i32 = arith.constant 0 : i32
    %c0_i32_0 = arith.constant 0 : i32
    return %arg0, %c0_i32 : i32, i32
  }
  func.func @transform_1(%arg0: i32) -> (i32, i32) {
    %c0_i32 = arith.constant 0 : i32
    %c0_i32_0 = arith.constant 0 : i32
    %c0_i32_1 = arith.constant 0 : i32
    return %c0_i32, %c0_i32_0 : i32, i32
  }
  func.func @transform_2(%arg0: i32) -> (i32, i32) {
    %c0_i32 = arith.constant 0 : i32
    %c0_i32_0 = arith.constant 0 : i32
    %c0_i32_1 = arith.constant 0 : i32
    return %c0_i32, %c0_i32_0 : i32, i32
  }
  func.func @transform_3(%arg0: i32) -> (i32, i32) {
    %c0_i32 = arith.constant 0 : i32
    %c0_i32_0 = arith.constant 0 : i32
    %c0_i32_1 = arith.constant 0 : i32
    return %c0_i32, %c0_i32_0 : i32, i32
  }
  func.func @transform_4(%arg0: i32) -> (i32, i32) {
    %c0_i32 = arith.constant 0 : i32
    %c0_i32_0 = arith.constant 0 : i32
    %c0_i32_1 = arith.constant 0 : i32
    return %c0_i32, %c0_i32_0 : i32, i32
  }
  func.func @transform_5(%arg0: i32) -> (i32, i32) {
    %c0_i32 = arith.constant 0 : i32
    %c0_i32_0 = arith.constant 0 : i32
    return %arg0, %c0_i32 : i32, i32
  }
}

</mosaic_0001>

<bundles_post_ra>
// kernel: net_log_softmax_forward.1
= control target key start
LH: loop header
LB: loop body
LE: loop exit
PB: predicated region body
PF: predicated region fallthrough
CT: control target
= control target key end

     0   :  { %v443_v1 = vmov 0.0   ;;  %vm444_vm0 = vmmov 0   ;;  %s568_s1 = inlined_call_operand.vmem [shape: bf16[256,128], index: 1, kind: input, shape index: {}]   ;;  %s569_s0 = inlined_call_operand.vmem [shape: bf16[8,256], index: 0, kind: input, shape index: {}]   ;;  %s570_s3 = inlined_call_operand.vmem [shape: bf16[128,128], index: 3, kind: input, shape index: {}]   ;;  %s571_s2 = inlined_call_operand.vmem [shape: f32[1,128], index: 2, kind: input, shape index: {}]   ;;  %s572_s4 = inlined_call_operand.vmem [shape: f32[1,128], index: 4, kind: input, shape index: {}]   ;;  %s573_s5 = inlined_call_operand.vmem [shape: f32[8,128], index: 5, kind: output, shape index: {}]  }
   0x1   :  { %v413_v0 = vld [vmem:[%s568_s1 + $0x40] sm:$0xff]   ;;  %391 = vmatprep.subr.bf16.mxu1 %v443_v1  ;;  %v415_v3 = vld [vmem:[%s568_s1 + $0x48] sm:$0xff]   ;;  %v417_v5 = vld [vmem:[%s568_s1 + $0x50] sm:$0xff]   ;;  %407 = vmatprep.mubr.msk.bf16.mxu1 %vm444_vm0, %v443_v1 }
   0x2   :  { %v414_v2 = vld [vmem:[%s568_s1] sm:$0xff]   ;;  %360 = vmatprep.subr.bf16.mxu0 %v413_v0  ;;  %v416_v4 = vld [vmem:[%s568_s1 + $0x8] sm:$0xff]   ;;  %v418_v6 = vld [vmem:[%s568_s1 + $0x10] sm:$0xff]  }
   0x3   :  { %361 = vmatpush3.bf16.msra.mxu0 %v414_v2  ;;  %v419_v7 = vld [vmem:[%s568_s1 + $0x58] sm:$0xff]   ;;  %v421_v9 = vld [vmem:[%s568_s1 + $0x60] sm:$0xff]   ;;  %v423_v11 = vld [vmem:[%s568_s1 + $0x68] sm:$0xff]  }
   0x4   :  { %362 = vmatprep.subr.bf16.mxu0 %v415_v3  ;;  %v420_v8 = vld [vmem:[%s568_s1 + $0x18] sm:$0xff]   ;;  %v422_v10 = vld [vmem:[%s568_s1 + $0x20] sm:$0xff]   ;;  %v424_v15 = vld [vmem:[%s568_s1 + $0x28] sm:$0xff]  }
   0x5   :  { %v21_v12 = vld [vmem:[%s569_s0] sm:$0xff]  ;;  %v425_v16 = vld [vmem:[%s568_s1 + $0x70] sm:$0xff]   ;;  %v432_v17 = vld [vmem:[%s570_s3 + $0x8] sm:$0xff]  }
   0x6   :  { %v334_v13 = vcombine.high %v21_v12, %v21_v12  ;;  %v431_v14 = vld [vmem:[%s570_s3] sm:$0xff]   ;;  %v426_v18 = vld [vmem:[%s568_s1 + $0x30] sm:$0xff]   ;;  %v427_v19 = vld [vmem:[%s568_s1 + $0x78] sm:$0xff]   ;;  %v333_v23 = vcombine.low %v21_v12, %v21_v12 }
   0x7   :  { %363 = vmatpush3.bf16.msra.mxu0 %v416_v4  ;;  %392 = vmatpush3.bf16.msra.mxu1 %v431_v14  ;;  %v433_v20 = vld [vmem:[%s570_s3 + $0x10] sm:$0xff]   ;;  %v428_v21 = vld [vmem:[%s568_s1 + $0x38] sm:$0xff]   ;;  %v435_v24 = vld [vmem:[%s570_s3 + $0x20] sm:$0xff]  }
   0x8   :  { %364 = vmatprep.subr.bf16.mxu0 %v417_v5  ;;  %196 = vmatprep.mubr.bf16.mxu0 %v334_v13  ;;  %v434_v22 = vld [vmem:[%s570_s3 + $0x18] sm:$0xff]   ;;  %v436_v25 = vld [vmem:[%s570_s3 + $0x28] sm:$0xff]   ;;  %v437_v26 = vld [vmem:[%s570_s3 + $0x30] sm:$0xff]  }
   0x9   :  { %393 = vmatprep.subr.bf16.mxu1 %v443_v1  ;;  %v438_v27 = vld [vmem:[%s570_s3 + $0x38] sm:$0xff]   ;;  %v332_v29 = vld [vmem:[%s571_s2] ss:$0 sm:$0xff] }
   0xa   :  { %v351_v37 = vld [vmem:[%s572_s4] ss:$0 sm:$0xff] }
   0xb   :  { %365 = vmatpush3.bf16.msra.mxu0 %v418_v6  ;;  %394 = vmatpush3.bf16.msra.mxu1 %v432_v17 }
   0xc   :  { %366 = vmatprep.subr.bf16.mxu0 %v419_v7  ;;  %395 = vmatprep.subr.bf16.mxu1 %v443_v1 }
   0xf   :  { %367 = vmatpush3.bf16.msra.mxu0 %v420_v8  ;;  %396 = vmatpush3.bf16.msra.mxu1 %v433_v20 }
  0x10   :  { %368 = vmatprep.subr.bf16.mxu0 %v421_v9  ;;  %397 = vmatprep.subr.bf16.mxu1 %v443_v1 }
  0x13   :  { %369 = vmatpush3.bf16.msra.mxu0 %v422_v10  ;;  %398 = vmatpush3.bf16.msra.mxu1 %v434_v22 }
  0x14   :  { %370 = vmatprep.subr.bf16.mxu0 %v423_v11  ;;  %399 = vmatprep.subr.bf16.mxu1 %v443_v1 }
  0x17   :  { %371 = vmatpush3.bf16.msra.mxu0 %v424_v15  ;;  %400 = vmatpush3.bf16.msra.mxu1 %v435_v24 }
  0x18   :  { %372 = vmatprep.subr.bf16.mxu0 %v425_v16  ;;  %401 = vmatprep.subr.bf16.mxu1 %v443_v1 }
  0x1b   :  { %373 = vmatpush3.bf16.msra.mxu0 %v426_v18  ;;  %402 = vmatpush3.bf16.msra.mxu1 %v436_v25 }
  0x1c   :  { %374 = vmatprep.subr.bf16.mxu0 %v427_v19  ;;  %403 = vmatprep.subr.bf16.mxu1 %v443_v1 }
  0x1f   :  { %375 = vmatpush3.bf16.msra.mxu0 %v428_v21  ;;  %404 = vmatpush3.bf16.msra.mxu1 %v437_v26 }
  0x20   :  { %405 = vmatprep.subr.bf16.mxu1 %v443_v1 }
  0x22   :  { %197 = vmatmul.mubr.bf16.vlgmr.msra.gmra.mrb[0].mxu0 %v333_v23 }
  0x23   :  { %406 = vmatpush3.bf16.msra.mxu1 %v438_v27 }
  0xf5   :  { %v376_v28 = vpop.f32.mrb[0].mxu0 }
  0xf6   :  { %v377_v30 = vpop.f32.mrb[1].mxu0 }
  0xf7   :  { %v378_v31 = vadd.f32 %v377_v30, %v376_v28  ;;  %v379_v32 = vpop.f32.mrb[2].mxu0 }
  0xf8   :  { %v380_v33 = vpop.f32.mrb[3].mxu0 }
  0xf9   :  { %v199_v34 = vadd.f32 %v378_v31, %v332_v29 }
  0xfb   :  { %v204_v35 = vmax.f32 %v199_v34, 0.0 }
  0xfd   :  { %v205_v36 = vpack.c.bf16 %v204_v35, %v204_v35 }
  0xff   :  { %408 = vmatmul.mubr.bf16.vlgmr.msra.gmra.mrb[0].mxu1 %v205_v36 }
 0x1d2   :  { %v311_v38 = vpop.f32.mrb[0].mxu1 }
 0x1d3   :  { %v312_v39 = vadd.f32 %v351_v37, %v311_v38  ;;  %v409_v40 = vpop.f32.mrb[1].mxu1 }
 0x1d4   :  { %v314_v41 = vpop.f32.mrb[2].mxu1 }
 0x1d5   :  { %317 = vmax.xlane.f32.xlu0 %v312_v39  ;;  %v410_v42 = vpop.f32.mrb[3].mxu1 }
 0x262   :  { %v318_v43 = vpop.xlane.xlu0 %317 }
 0x263   :  { %v319_v44 = vsub.f32 %v312_v39, %v318_v43 }
 0x265   :  { %v320_v45 = vmul.f32 1.442695, %v319_v44 }
 0x267   :  { %439 = vpow2.f32 %v320_v45 }
 0x271   :  { %v440_v46 = vpop.eup %439 }
 0x272   :  { %322 = vadd.xlane.f32.xlu0 %v440_v46 }
 0x2ff   :  { %v323_v47 = vpop.xlane.xlu0 %322 }
 0x300   :  { %441 = vlog2.f32 %v323_v47 }
 0x30a   :  { %v442_v48 = vpop.eup %441 }
 0x30b   :  { %v325_v49 = vmul.f32 0.6931472, %v442_v48 }
 0x30d   :  { %v326_v50 = vsub.f32 %v319_v44, %v325_v49 }
 0x30f   :  { %327 = vst [vmem:[%s573_s5] sm:$0xff] %v326_v50 }

</bundles_post_ra>
